<compile_context>
chip_gen: v5e
topology: v5e:2x2
jax: 0.10.0
libtpu: 0.0.40
codegen_flags: <defaults>
</compile_context>

<pallas_src>
import jax
import jax.numpy as jnp
from jax import lax
from jax.experimental import pallas as pl
from jax.experimental.pallas import tpu as pltpu


def _round_up(n, m):
    return ((n + m - 1) // m) * m


def _pick_t_block(seq_len, bp, d, h, *, vmem_budget_bytes=24 * 1024 * 1024):
    """Largest divisor of seq_len whose per-block VMEM footprint fits budget.

    Footprint per time block: 2x double-buffered bf16 x block + f32 z scratch.
    The budget is conservative so the same choice fits v7x (64 MiB physical,
    32 MiB scoped default) as well as v5e/v6e.
    """
    best = 1
    for t in range(1, seq_len + 1):
        if seq_len % t:
            continue
        foot = 2 * t * bp * d * 2 + t * bp * h * 4
        if foot <= vmem_budget_bytes:
            best = t
    return best


def _encoder_kernel(x_ref, wih_ref, whh_ref, b_ref, out_ref, h_ref, z_ref):
    g = pl.program_id(0)
    ng = pl.num_programs(0)

    bp, hdim = h_ref.shape                  # fused (padded) batch, hidden
    t_block = z_ref.shape[0] // bp          # timesteps per grid step

    @pl.when(g == 0)
    def _init():
        h_ref[...] = jnp.zeros_like(h_ref)

    # Hoisted input projection for the whole time block:
    # one (t_block*BP, D)bf16 @ (D, H)bf16 -> f32 MXU matmul, bias folded in.
    z_ref[...] = (
        jnp.dot(x_ref[...], wih_ref[...], preferred_element_type=jnp.float32)
        + b_ref[...])

    # bf16 W_hh hoisted once: only 8 vregs (vs 16 for f32), safe to keep live
    # across the (capped) unrolled recurrence body.
    whh = whh_ref[...]

    def step(i, h):
        off = pl.multiple_of(i * bp, bp)
        zt = z_ref[pl.ds(off, bp), :]       # (BP, H) f32 pre-projected input
        # MXU operands in bf16, accumulate f32; tanh/add stay f32 (VPU/EUP).
        hb = h.astype(jnp.bfloat16)
        return jnp.tanh(
            zt + jnp.dot(hb, whh, preferred_element_type=jnp.float32))

    h = lax.fori_loop(0, t_block, step, h_ref[...],
                      unroll=min(t_block, 8))
    h_ref[...] = h

    @pl.when(g == ng - 1)
    def _finalize():
        # Full (BP, H) tile -> single unmasked store; the (B, 2H) slicing /
        # concat is done in the JAX wrapper (free layout plumbing).
        out_ref[...] = h


def encoder_forward(x, w_ih, w_hh, b_ih, b_hh, *, t_block=None):
    """x: (S, B, D) float32.  Returns (B, 2*H) float32."""
    S, B, D = x.shape
    H = w_ih.shape[0]

    # Fuse the two directions into one batch and pad to the 8-row sublane
    # granule: rows [0, B) = x[t] (forward), rows [B, 2B) = x[S-1-t]
    # (backward), remaining rows zero (discarded in the wrapper at the end).
    BP = _round_up(max(2 * B, 8), 8)

    if t_block is None:
        t_block = _pick_t_block(S, BP, D, H)
    assert S % t_block == 0

    pad = jnp.zeros((S, BP - 2 * B, D), jnp.float32)
    xcat = jnp.concatenate([x, x[::-1], pad], axis=1)          # (S, BP, D)
    # bf16 only for the MXU operands (accumulation stays f32 in-kernel).
    x2d = xcat.reshape(S * BP, D).astype(jnp.bfloat16)

    wih_t = jnp.transpose(w_ih).astype(jnp.bfloat16)           # (D, H) bf16
    whh_t = jnp.transpose(w_hh).astype(jnp.bfloat16)           # (H, H) bf16
    bias = (b_ih + b_hh).reshape(1, H).astype(jnp.float32)     # f32

    # Explicit VMEM budget (weights single-buffered, x block double-buffered).
    vmem_bytes = (2 * t_block * BP * D * 2      # x block (bf16, 2 buffers)
                  + t_block * BP * H * 4        # z scratch (f32)
                  + BP * H * 4                  # h scratch (f32)
                  + (D * H + H * H) * 2         # weights (bf16, 1 buffer)
                  + H * 4                       # bias
                  + BP * H * 4)                 # output block
    vmem_limit = min(max(2 * vmem_bytes, 32 * 1024 * 1024), 64 * 1024 * 1024)

    out_full = pl.pallas_call(
        _encoder_kernel,
        out_shape=jax.ShapeDtypeStruct((BP, H), jnp.float32),
        grid_spec=pltpu.PrefetchScalarGridSpec(
            num_scalar_prefetch=0,
            grid=(S // t_block,),
            in_specs=[
                # fused fwd+bwd inputs for one time block (streamed, 2 buffers)
                pl.BlockSpec((t_block * BP, D), lambda g: (g, 0)),
                # weights & bias: constant index_map -> loaded once; single-
                # buffered (no point double-buffering a never-changing block).
                pl.BlockSpec((D, H), lambda g: (0, 0),
                             pipeline_mode=pl.Buffered(1)),
                pl.BlockSpec((H, H), lambda g: (0, 0),
                             pipeline_mode=pl.Buffered(1)),
                pl.BlockSpec((1, H), lambda g: (0, 0),
                             pipeline_mode=pl.Buffered(1)),
            ],
            out_specs=pl.BlockSpec((BP, H), lambda g: (0, 0)),
            scratch_shapes=[
                pltpu.VMEM((BP, H), jnp.float32),              # fused hidden state
                pltpu.VMEM((t_block * BP, H), jnp.float32),    # per-block input proj
            ],
        ),
        compiler_params=pltpu.CompilerParams(
            dimension_semantics=("arbitrary",),                # time recurrence
            vmem_limit_bytes=int(vmem_limit),
        ),
    )(x2d, wih_t, whh_t, bias)

    # Layout plumbing outside the kernel: rows [0,B) = final forward hidden,
    # rows [B,2B) = final backward hidden, padded rows discarded.
    return jnp.concatenate([out_full[:B], out_full[B:2 * B]], axis=-1)


def encoder_reference(x, w_ih, w_hh, b_ih, b_hh):
    """Pure-JAX f32 reference mirroring the (shared-weight) PyTorch forward."""
    S, B, D = x.shape
    H = w_ih.shape[0]
    hf = jnp.zeros((B, H), jnp.float32)
    hb = jnp.zeros((B, H), jnp.float32)
    for i in range(S):
        hf = jnp.tanh(x[i] @ w_ih.T + b_ih + hf @ w_hh.T + b_hh)
        hb = jnp.tanh(x[S - 1 - i] @ w_ih.T + b_ih + hb @ w_hh.T + b_hh)
    return jnp.concatenate([hf, hb], axis=-1)


if __name__ == "__main__":
    # Small, tile-friendly shapes consistent with the module's forward:
    SEQ, BATCH, INPUT_DIM, HIDDEN = 8, 2, 64, 128

    key = jax.random.PRNGKey(0)
    k_x, k_wih, k_whh, k_bih, k_bhh = jax.random.split(key, 5)

    x = jax.random.normal(k_x, (SEQ, BATCH, INPUT_DIM), dtype=jnp.float32)

    # Deterministic parameter init (PyTorch nn.RNN-style uniform(-k, k), k=1/sqrt(H)).
    k_init = 1.0 / (HIDDEN ** 0.5)
    w_ih = jax.random.uniform(k_wih, (HIDDEN, INPUT_DIM), jnp.float32, -k_init, k_init)
    w_hh = jax.random.uniform(k_whh, (HIDDEN, HIDDEN), jnp.float32, -k_init, k_init)
    b_ih = jax.random.uniform(k_bih, (HIDDEN,), jnp.float32, -k_init, k_init)
    b_hh = jax.random.uniform(k_bhh, (HIDDEN,), jnp.float32, -k_init, k_init)

    out = encoder_forward(x, w_ih, w_hh, b_ih, b_hh)
    out = jax.block_until_ready(out)

    ref = encoder_reference(x, w_ih, w_hh, b_ih, b_hh)
    assert out.shape == (BATCH, 2 * HIDDEN)
    # bf16 MXU operands with f32 accumulation -> relaxed tolerance vs f32 ref.
    assert jnp.allclose(out, ref, atol=5e-2, rtol=5e-2), "mismatch vs reference"

    # TODO(synk): retain_sequence=True path (per-step concatenated embeddings)
    # not implemented; the default forward (retain_sequence=False) is covered.
    print("KERNEL_OK")
</pallas_src>

<mosaic_0001>
module attributes {stable_mosaic.version = 11 : i64} {
  func.func @_encoder_kernel(%arg0: i32, %arg1: memref<64x64xbf16, #tpu.memory_space<vmem>>, %arg2: memref<64x128xbf16, #tpu.memory_space<vmem>>, %arg3: memref<128x128xbf16, #tpu.memory_space<vmem>>, %arg4: memref<1x128xf32, #tpu.memory_space<vmem>>, %arg5: memref<8x128xf32, #tpu.memory_space<vmem>>, %arg6: memref<8x128xf32, #tpu.memory_space<vmem>>, %arg7: memref<64x128xf32, #tpu.memory_space<vmem>>) attributes {dimension_semantics = [#tpu.dimension_semantics<arbitrary>], iteration_bounds = array<i64: 1>, scalar_prefetch = 0 : i64, scratch_operands = 2 : i64, tpu.core_type = #tpu.core_type<tc>, window_params = [{transform_indices = @transform_0, window_bounds = array<i64: 64, 64>}, {pipeline_mode = #tpu.pipeline_mode<synchronous>, transform_indices = @transform_1, window_bounds = array<i64: 64, 128>}, {pipeline_mode = #tpu.pipeline_mode<synchronous>, transform_indices = @transform_2, window_bounds = array<i64: 128, 128>}, {pipeline_mode = #tpu.pipeline_mode<synchronous>, transform_indices = @transform_3, window_bounds = array<i64: 1, 128>}, {pipeline_mode = #tpu.pipeline_mode<synchronous>, transform_indices = @transform_4, window_bounds = array<i64: 8, 128>}]} {
    %c0_i32 = arith.constant 0 : i32
    %0 = arith.cmpi eq, %arg0, %c0_i32 : i32
    %1 = arith.extui %0 : i1 to i32
    %c0_i32_0 = arith.constant 0 : i32
    %2 = arith.cmpi ne, %1, %c0_i32_0 : i32
    scf.if %2 {
      %cst_41 = arith.constant 0.000000e+00 : f32
      %80 = vector.broadcast %cst_41 : f32 to vector<8x128xf32>
      %c0_42 = arith.constant 0 : index
      %c0_43 = arith.constant 0 : index
      %81 = vector.load %arg6[%c0_42, %c0_43] : memref<8x128xf32, #tpu.memory_space<vmem>>, vector<8x128xf32>
      tpu.vector_store %arg6[%c0_42, %c0_43], %80 {strides = array<i32>} : memref<8x128xf32, #tpu.memory_space<vmem>>, vector<8x128xf32>,
    } else {
    }
    %c0 = arith.constant 0 : index
    %c0_1 = arith.constant 0 : index
    %3 = vector.load %arg1[%c0, %c0_1] : memref<64x64xbf16, #tpu.memory_space<vmem>>, vector<64x64xbf16>
    %c0_2 = arith.constant 0 : index
    %c0_3 = arith.constant 0 : index
    %4 = vector.load %arg2[%c0_2, %c0_3] : memref<64x128xbf16, #tpu.memory_space<vmem>>, vector<64x128xbf16>
    %cst = arith.constant dense<0.000000e+00> : vector<64x128xf32>
    %5 = tpu.matmul %3, %4, %cst {dimension_numbers = #tpu.dot_dimension_numbers<[1], [0], [0], [1], [0, 0, 1, 1], [], []>} : vector<64x64xbf16>, vector<64x128xbf16>, vector<64x128xf32> -> vector<64x128xf32>
    %c0_4 = arith.constant 0 : index
    %c0_5 = arith.constant 0 : index
    %6 = vector.load %arg4[%c0_4, %c0_5] : memref<1x128xf32, #tpu.memory_space<vmem>>, vector<1x128xf32>
    %7 = vector.broadcast %6 : vector<1x128xf32> to vector<64x128xf32>
    %8 = arith.addf %5, %7 : vector<64x128xf32>
    %c0_6 = arith.constant 0 : index
    %c0_7 = arith.constant 0 : index
    %9 = vector.load %arg7[%c0_6, %c0_7] : memref<64x128xf32, #tpu.memory_space<vmem>>, vector<64x128xf32>
    tpu.vector_store %arg7[%c0_6, %c0_7], %8 {strides = array<i32>} : memref<64x128xf32, #tpu.memory_space<vmem>>, vector<64x128xf32>,
    %c0_8 = arith.constant 0 : index
    %c0_9 = arith.constant 0 : index
    %10 = vector.load %arg3[%c0_8, %c0_9] : memref<128x128xbf16, #tpu.memory_space<vmem>>, vector<128x128xbf16>
    %c0_10 = arith.constant 0 : index
    %c0_11 = arith.constant 0 : index
    %11 = vector.load %arg6[%c0_10, %c0_11] : memref<8x128xf32, #tpu.memory_space<vmem>>, vector<8x128xf32>
    %c0_i32_12 = arith.constant 0 : i32
    %c8_i32 = arith.constant 8 : i32
    %12 = arith.muli %c0_i32_12, %c8_i32 : i32
    %13 = tpu.assume_multiple %12, 8 : i32
    %14 = arith.index_cast %13 : i32 to index
    %c0_13 = arith.constant 0 : index
    %15 = vector.load %arg7[%14, %c0_13] : memref<64x128xf32, #tpu.memory_space<vmem>>, vector<8x128xf32>
    %16 = arith.truncf %11 : vector<8x128xf32> to vector<8x128xbf16>
    %cst_14 = arith.constant dense<0.000000e+00> : vector<8x128xf32>
    %17 = tpu.matmul %16, %10, %cst_14 {dimension_numbers = #tpu.dot_dimension_numbers<[1], [0], [0], [1], [0, 0, 1, 1], [], []>} : vector<8x128xbf16>, vector<128x128xbf16>, vector<8x128xf32> -> vector<8x128xf32>
    %18 = arith.addf %15, %17 : vector<8x128xf32>
    %19 = math.tanh %18 : vector<8x128xf32>
    %c1_i32 = arith.constant 1 : i32
    %c8_i32_15 = arith.constant 8 : i32
    %20 = arith.muli %c1_i32, %c8_i32_15 : i32
    %21 = tpu.assume_multiple %20, 8 : i32
    %22 = arith.index_cast %21 : i32 to index
    %c0_16 = arith.constant 0 : index
    %23 = vector.load %arg7[%22, %c0_16] : memref<64x128xf32, #tpu.memory_space<vmem>>, vector<8x128xf32>
    %24 = arith.truncf %19 : vector<8x128xf32> to vector<8x128xbf16>
    %cst_17 = arith.constant dense<0.000000e+00> : vector<8x128xf32>
    %25 = tpu.matmul %24, %10, %cst_17 {dimension_numbers = #tpu.dot_dimension_numbers<[1], [0], [0], [1], [0, 0, 1, 1], [], []>} : vector<8x128xbf16>, vector<128x128xbf16>, vector<8x128xf32> -> vector<8x128xf32>
    %26 = arith.addf %23, %25 : vector<8x128xf32>
    %27 = math.tanh %26 : vector<8x128xf32>
    %c2_i32 = arith.constant 2 : i32
    %c8_i32_18 = arith.constant 8 : i32
    %28 = arith.muli %c2_i32, %c8_i32_18 : i32
    %29 = tpu.assume_multiple %28, 8 : i32
    %30 = arith.index_cast %29 : i32 to index
    %c0_19 = arith.constant 0 : index
    %31 = vector.load %arg7[%30, %c0_19] : memref<64x128xf32, #tpu.memory_space<vmem>>, vector<8x128xf32>
    %32 = arith.truncf %27 : vector<8x128xf32> to vector<8x128xbf16>
    %cst_20 = arith.constant dense<0.000000e+00> : vector<8x128xf32>
    %33 = tpu.matmul %32, %10, %cst_20 {dimension_numbers = #tpu.dot_dimension_numbers<[1], [0], [0], [1], [0, 0, 1, 1], [], []>} : vector<8x128xbf16>, vector<128x128xbf16>, vector<8x128xf32> -> vector<8x128xf32>
    %34 = arith.addf %31, %33 : vector<8x128xf32>
    %35 = math.tanh %34 : vector<8x128xf32>
    %c3_i32 = arith.constant 3 : i32
    %c8_i32_21 = arith.constant 8 : i32
    %36 = arith.muli %c3_i32, %c8_i32_21 : i32
    %37 = tpu.assume_multiple %36, 8 : i32
    %38 = arith.index_cast %37 : i32 to index
    %c0_22 = arith.constant 0 : index
    %39 = vector.load %arg7[%38, %c0_22] : memref<64x128xf32, #tpu.memory_space<vmem>>, vector<8x128xf32>
    %40 = arith.truncf %35 : vector<8x128xf32> to vector<8x128xbf16>
    %cst_23 = arith.constant dense<0.000000e+00> : vector<8x128xf32>
    %41 = tpu.matmul %40, %10, %cst_23 {dimension_numbers = #tpu.dot_dimension_numbers<[1], [0], [0], [1], [0, 0, 1, 1], [], []>} : vector<8x128xbf16>, vector<128x128xbf16>, vector<8x128xf32> -> vector<8x128xf32>
    %42 = arith.addf %39, %41 : vector<8x128xf32>
    %43 = math.tanh %42 : vector<8x128xf32>
    %c4_i32 = arith.constant 4 : i32
    %c8_i32_24 = arith.constant 8 : i32
    %44 = arith.muli %c4_i32, %c8_i32_24 : i32
    %45 = tpu.assume_multiple %44, 8 : i32
    %46 = arith.index_cast %45 : i32 to index
    %c0_25 = arith.constant 0 : index
    %47 = vector.load %arg7[%46, %c0_25] : memref<64x128xf32, #tpu.memory_space<vmem>>, vector<8x128xf32>
    %48 = arith.truncf %43 : vector<8x128xf32> to vector<8x128xbf16>
    %cst_26 = arith.constant dense<0.000000e+00> : vector<8x128xf32>
    %49 = tpu.matmul %48, %10, %cst_26 {dimension_numbers = #tpu.dot_dimension_numbers<[1], [0], [0], [1], [0, 0, 1, 1], [], []>} : vector<8x128xbf16>, vector<128x128xbf16>, vector<8x128xf32> -> vector<8x128xf32>
    %50 = arith.addf %47, %49 : vector<8x128xf32>
    %51 = math.tanh %50 : vector<8x128xf32>
    %c5_i32 = arith.constant 5 : i32
    %c8_i32_27 = arith.constant 8 : i32
    %52 = arith.muli %c5_i32, %c8_i32_27 : i32
    %53 = tpu.assume_multiple %52, 8 : i32
    %54 = arith.index_cast %53 : i32 to index
    %c0_28 = arith.constant 0 : index
    %55 = vector.load %arg7[%54, %c0_28] : memref<64x128xf32, #tpu.memory_space<vmem>>, vector<8x128xf32>
    %56 = arith.truncf %51 : vector<8x128xf32> to vector<8x128xbf16>
    %cst_29 = arith.constant dense<0.000000e+00> : vector<8x128xf32>
    %57 = tpu.matmul %56, %10, %cst_29 {dimension_numbers = #tpu.dot_dimension_numbers<[1], [0], [0], [1], [0, 0, 1, 1], [], []>} : vector<8x128xbf16>, vector<128x128xbf16>, vector<8x128xf32> -> vector<8x128xf32>
    %58 = arith.addf %55, %57 : vector<8x128xf32>
    %59 = math.tanh %58 : vector<8x128xf32>
    %c6_i32 = arith.constant 6 : i32
    %c8_i32_30 = arith.constant 8 : i32
    %60 = arith.muli %c6_i32, %c8_i32_30 : i32
    %61 = tpu.assume_multiple %60, 8 : i32
    %62 = arith.index_cast %61 : i32 to index
    %c0_31 = arith.constant 0 : index
    %63 = vector.load %arg7[%62, %c0_31] : memref<64x128xf32, #tpu.memory_space<vmem>>, vector<8x128xf32>
    %64 = arith.truncf %59 : vector<8x128xf32> to vector<8x128xbf16>
    %cst_32 = arith.constant dense<0.000000e+00> : vector<8x128xf32>
    %65 = tpu.matmul %64, %10, %cst_32 {dimension_numbers = #tpu.dot_dimension_numbers<[1], [0], [0], [1], [0, 0, 1, 1], [], []>} : vector<8x128xbf16>, vector<128x128xbf16>, vector<8x128xf32> -> vector<8x128xf32>
    %66 = arith.addf %63, %65 : vector<8x128xf32>
    %67 = math.tanh %66 : vector<8x128xf32>
    %c7_i32 = arith.constant 7 : i32
    %c8_i32_33 = arith.constant 8 : i32
    %68 = arith.muli %c7_i32, %c8_i32_33 : i32
    %69 = tpu.assume_multiple %68, 8 : i32
    %70 = arith.index_cast %69 : i32 to index
    %c0_34 = arith.constant 0 : index
    %71 = vector.load %arg7[%70, %c0_34] : memref<64x128xf32, #tpu.memory_space<vmem>>, vector<8x128xf32>
    %72 = arith.truncf %67 : vector<8x128xf32> to vector<8x128xbf16>
    %cst_35 = arith.constant dense<0.000000e+00> : vector<8x128xf32>
    %73 = tpu.matmul %72, %10, %cst_35 {dimension_numbers = #tpu.dot_dimension_numbers<[1], [0], [0], [1], [0, 0, 1, 1], [], []>} : vector<8x128xbf16>, vector<128x128xbf16>, vector<8x128xf32> -> vector<8x128xf32>
    %74 = arith.addf %71, %73 : vector<8x128xf32>
    %75 = math.tanh %74 : vector<8x128xf32>
    %c8_i32_36 = arith.constant 8 : i32
    %c0_37 = arith.constant 0 : index
    %c0_38 = arith.constant 0 : index
    %76 = vector.load %arg6[%c0_37, %c0_38] : memref<8x128xf32, #tpu.memory_space<vmem>>, vector<8x128xf32>
    tpu.vector_store %arg6[%c0_37, %c0_38], %75 {strides = array<i32>} : memref<8x128xf32, #tpu.memory_space<vmem>>, vector<8x128xf32>,
    %c0_i32_39 = arith.constant 0 : i32
    %77 = arith.cmpi eq, %arg0, %c0_i32_39 : i32
    %78 = arith.extui %77 : i1 to i32
    %c0_i32_40 = arith.constant 0 : i32
    %79 = arith.cmpi ne, %78, %c0_i32_40 : i32
    scf.if %79 {
      %c0_41 = arith.constant 0 : index
      %c0_42 = arith.constant 0 : index
      %80 = vector.load %arg5[%c0_41, %c0_42] : memref<8x128xf32, #tpu.memory_space<vmem>>, vector<8x128xf32>
      tpu.vector_store %arg5[%c0_41, %c0_42], %75 {strides = array<i32>} : memref<8x128xf32, #tpu.memory_space<vmem>>, vector<8x128xf32>,
    } else {
    }
    return
  }
  func.func @transform_0(%arg0: i32) -> (i32, i32) {
    %c0_i32 = arith.constant 0 : i32
    %c0_i32_0 = arith.constant 0 : i32
    return %arg0, %c0_i32 : i32, i32
  }
  func.func @transform_1(%arg0: i32) -> (i32, i32) {
    %c0_i32 = arith.constant 0 : i32
    %c0_i32_0 = arith.constant 0 : i32
    %c0_i32_1 = arith.constant 0 : i32
    return %c0_i32, %c0_i32_0 : i32, i32
  }
  func.func @transform_2(%arg0: i32) -> (i32, i32) {
    %c0_i32 = arith.constant 0 : i32
    %c0_i32_0 = arith.constant 0 : i32
    %c0_i32_1 = arith.constant 0 : i32
    return %c0_i32, %c0_i32_0 : i32, i32
  }
  func.func @transform_3(%arg0: i32) -> (i32, i32) {
    %c0_i32 = arith.constant 0 : i32
    %c0_i32_0 = arith.constant 0 : i32
    %c0_i32_1 = arith.constant 0 : i32
    return %c0_i32, %c0_i32_0 : i32, i32
  }
  func.func @transform_4(%arg0: i32) -> (i32, i32) {
    %c0_i32 = arith.constant 0 : i32
    %c0_i32_0 = arith.constant 0 : i32
    %c0_i32_1 = arith.constant 0 : i32
    return %c0_i32, %c0_i32_0 : i32, i32
  }
}

</mosaic_0001>

<bundles_post_ra>
// kernel: tpu_custom_call.1
= control target key start
LH: loop header
LB: loop body
LE: loop exit
PB: predicated region body
PF: predicated region fallthrough
CT: control target
= control target key end

     0   :  { %9 = vsyncpa [#allocation5], 0  ;;  %s727_s0 = inlined_call_operand.hbm [shape: bf16[64,64], index: 0, kind: input, shape index: {}]   ;;  %s728_s1 = inlined_call_operand.hbm [shape: bf16[64,128], index: 1, kind: input, shape index: {}]   ;;  %s729_s2 = inlined_call_operand.hbm [shape: bf16[128,128], index: 2, kind: input, shape index: {}]   ;;  %s730_s3 = inlined_call_operand.vmem [shape: f32[1,128], index: 3, kind: input, shape index: {}]   ;;  %s731_s4 = inlined_call_operand.hbm [shape: f32[8,128], index: 4, kind: output, shape index: {}]  }
   0x1   :  { %10 = vsyncpa [#allocation8], 0 }
   0x2   :  { %11 = vsyncpa [#allocation6], 0  ;;  %s29_s17 = sshll.u32 %s728_s1, 4  ;;  %s626_s18 = smov [#allocation7]   ;;  %s30_s17 = int_to_ptr.hbm [resolvable:$true] %s29_s17 }
   0x3   :  { %s31_s19 = sshll.u32 %s626_s18, 4  ;;  %s16_s22 = sshll.u32 %s727_s0, 4  ;;  %s32_s19 = int_to_ptr.vmem [resolvable:$true] %s31_s19  ;;  %s17_s22 = int_to_ptr.hbm [resolvable:$true] %s16_s22 }
   0x4   :  { %s627_s23 = smov 64   ;;  %s628_s24 = smov 4  }
   0x5   :  { %37 = dma.hbm_to_vmem [thread:$0]  %s30_s17, 512, %s32_s19, [#allocation8], %s627_s23, %s627_s23, %s628_s24  }
   0x6   :  { %s629_s25 = smov [#allocation4]   ;;  %s42_s29 = sshll.u32 %s729_s2, 4  ;;  %s43_s29 = int_to_ptr.hbm [resolvable:$true] %s42_s29 }
   0x7   :  { %s18_s26 = sshll.u32 %s629_s25, 4  ;;  %s630_s1 = smov [#allocation9]   ;;  %s19_s26 = int_to_ptr.vmem [resolvable:$true] %s18_s26 }
   0x8   :  { %24 = dma.hbm_to_vmem [thread:$0]  %s17_s22, 512, %s19_s26, [#allocation5], %s627_s23, %s627_s23, %s628_s24  }
   0x9   :  { %s44_s30 = sshll.u32 %s630_s1, 4  ;;  %s45_s30 = int_to_ptr.vmem [resolvable:$true] %s44_s30 }
   0xa   :  { %50 = dma.hbm_to_vmem [thread:$0]  %s43_s29, 1024, %s45_s30, [#allocation8], %s627_s23, %s627_s23, %s628_s24  }
   0xb   :  { %620 = dma.done.wait [#allocation5], 512  }
   0xc   :  { %621 = vsyncadd [#allocation5], 4294966784 }
   0xd   :  { %622 = dma.done.wait [#allocation8], 1536  }
   0xe   :  { %623 = vsyncadd [#allocation8], 4294965760  ;;  %v667_v0 = vld [vmem:[#allocation9 + $0x38] sm:$0xff]  ;;  %v670_v2 = vld [vmem:[#allocation9 + $0x30] sm:$0xff]  ;;  %vm135_vm0 = vcmask 523264   ;;  %v631_v13 = vmov 0.0|0.0  }
   0xf   :  { %v491_v1 = vld [vmem:[#allocation7 + $0x18] sm:$0xff]  ;;  %252 = vmatpush.bf16.msra.mxu1 %v667_v0  ;;  %v490_v3 = vld [vmem:[#allocation7 + $0x10] sm:$0xff]  ;;  %270 = vmatpush.bf16.msra.mxu2 %v667_v0  ;;  %v675_v4 = vld [vmem:[#allocation9 + $0x28] sm:$0xff]  ;;  %s405_s8 = sshll.u32 %s731_s4, 4  ;;  %s406_s8 = int_to_ptr.hbm [resolvable:$true] %s405_s8 }
  0x10   :  { %152 = vmatpush.bf16.msra.mxu0 %v491_v1  ;;  %288 = vmatpush.bf16.msra.mxu3 %v667_v0  ;;  %v489_v5 = vld [vmem:[#allocation7 + $0x8] sm:$0xff]  ;;  %v680_v6 = vld [vmem:[#allocation9 + $0x20] sm:$0xff]  ;;  %v495_v9 = vld [vmem:[#allocation9 + $0x18] sm:$0xff] }
  0x11   :  { %v488_v7 = vld [vmem:[#allocation7] sm:$0xff]  ;;  %v494_v10 = vld [vmem:[#allocation9 + $0x10] sm:$0xff]  ;;  %v493_v11 = vld [vmem:[#allocation9 + $0x8] sm:$0xff] }
  0x12   :  { %v484_v8 = vld [vmem:[#allocation4] sm:$0xff]  ;;  %v485_v22 = vld [vmem:[#allocation4 + $0x8] sm:$0xff]  ;;  %v486_v37 = vld [vmem:[#allocation4 + $0x10] sm:$0xff] }
  0x13   :  { %253 = vmatpush.bf16.msra.mxu1 %v670_v2  ;;  %271 = vmatpush.bf16.msra.mxu2 %v670_v2  ;;  %v492_v12 = vld [vmem:[#allocation9] sm:$0xff]  ;;  %v487_v45 = vld [vmem:[#allocation4 + $0x18] sm:$0xff] }
  0x14   :  { %153 = vmatpush.bf16.msra.mxu0 %v490_v3  ;;  %289 = vmatpush.bf16.msra.mxu3 %v670_v2  ;;  %v711_v14 = vld [vmem:[%s730_s3] ss:$0 sm:$0xff]  ;;  %s632_s3 = smov [#allocation10]  }
  0x15   :  { %s403_s5 = sshll.u32 %s632_s3, 4  ;;  %s404_s5 = int_to_ptr.vmem [resolvable:$true] %s403_s5 }
  0x17   :  { %254 = vmatpush.bf16.msra.mxu1 %v675_v4  ;;  %272 = vmatpush.bf16.msra.mxu2 %v675_v4 }
  0x18   :  { %154 = vmatpush.bf16.msra.mxu0 %v489_v5  ;;  %290 = vmatpush.bf16.msra.mxu3 %v675_v4 }
  0x1b   :  { %255 = vmatpush.bf16.msra.mxu1 %v680_v6  ;;  %273 = vmatpush.bf16.msra.mxu2 %v680_v6 }
  0x1c   :  { %155 = vmatpush.bf16.msra.mxu0 %v488_v7  ;;  %291 = vmatpush.bf16.msra.mxu3 %v680_v6 }
  0x1f   :  { %448 = vmatmul.msk.bf16.vlgmr.msra.gmra.mxu0 %vm135_vm0, %v484_v8  ;;  %256 = vmatpush.bf16.msra.mxu1 %v495_v9 }
  0x20   :  { %360 = vmatpush.bf16.msrb.mxu0 %v667_v0  ;;  %274 = vmatpush.bf16.msra.mxu2 %v495_v9 }
  0x21   :  { %292 = vmatpush.bf16.msra.mxu3 %v495_v9 }
  0x23   :  { %257 = vmatpush.bf16.msra.mxu1 %v494_v10 }
  0x24   :  { %361 = vmatpush.bf16.msrb.mxu0 %v670_v2  ;;  %275 = vmatpush.bf16.msra.mxu2 %v494_v10 }
  0x25   :  { %293 = vmatpush.bf16.msra.mxu3 %v494_v10 }
  0x27   :  { %258 = vmatpush.bf16.msra.mxu1 %v493_v11 }
  0x28   :  { %362 = vmatpush.bf16.msrb.mxu0 %v675_v4  ;;  %276 = vmatpush.bf16.msra.mxu2 %v493_v11 }
  0x29   :  { %294 = vmatpush.bf16.msra.mxu3 %v493_v11 }
  0x2b   :  { %259 = vmatpush.bf16.msra.mxu1 %v492_v12 }
  0x2c   :  { %363 = vmatpush.bf16.msrb.mxu0 %v680_v6  ;;  %277 = vmatpush.bf16.msra.mxu2 %v492_v12 }
  0x2d   :  { %295 = vmatpush.bf16.msra.mxu3 %v492_v12 }
  0x2e   :  { %260 = vmatmul.bf16.vlgmr.msra.gmra.mxu1 %v631_v13 }
  0x2f   :  { %306 = vmatpush.bf16.msrb.mxu1 %v667_v0  ;;  %449 = vmatmul.msk.bf16.gmra.mxu0 %vm135_vm0, %v485_v22 }
  0x30   :  { %324 = vmatpush.bf16.msrb.mxu2 %v667_v0  ;;  %364 = vmatpush.bf16.msrb.mxu0 %v495_v9 }
  0x31   :  { %342 = vmatpush.bf16.msrb.mxu3 %v667_v0 }
  0x33   :  { %307 = vmatpush.bf16.msrb.mxu1 %v670_v2 }
  0x34   :  { %325 = vmatpush.bf16.msrb.mxu2 %v670_v2  ;;  %365 = vmatpush.bf16.msrb.mxu0 %v494_v10 }
  0x35   :  { %343 = vmatpush.bf16.msrb.mxu3 %v670_v2 }
  0x37   :  { %308 = vmatpush.bf16.msrb.mxu1 %v675_v4 }
  0x38   :  { %326 = vmatpush.bf16.msrb.mxu2 %v675_v4  ;;  %366 = vmatpush.bf16.msrb.mxu0 %v493_v11 }
  0x39   :  { %344 = vmatpush.bf16.msrb.mxu3 %v675_v4 }
  0x3b   :  { %309 = vmatpush.bf16.msrb.mxu1 %v680_v6 }
  0x3c   :  { %327 = vmatpush.bf16.msrb.mxu2 %v680_v6  ;;  %367 = vmatpush.bf16.msrb.mxu0 %v492_v12 }
  0x3d   :  { %345 = vmatpush.bf16.msrb.mxu3 %v680_v6 }
  0x3f   :  { %310 = vmatpush.bf16.msrb.mxu1 %v495_v9  ;;  %450 = vmatmul.msk.bf16.gmra.mxu0 %vm135_vm0, %v486_v37 }
  0x40   :  { %328 = vmatpush.bf16.msrb.mxu2 %v495_v9 }
  0x41   :  { %346 = vmatpush.bf16.msrb.mxu3 %v495_v9 }
  0x43   :  { %311 = vmatpush.bf16.msrb.mxu1 %v494_v10 }
  0x44   :  { %329 = vmatpush.bf16.msrb.mxu2 %v494_v10 }
  0x45   :  { %347 = vmatpush.bf16.msrb.mxu3 %v494_v10 }
  0x47   :  { %312 = vmatpush.bf16.msrb.mxu1 %v493_v11 }
  0x48   :  { %330 = vmatpush.bf16.msrb.mxu2 %v493_v11 }
  0x49   :  { %348 = vmatpush.bf16.msrb.mxu3 %v493_v11 }
  0x4b   :  { %313 = vmatpush.bf16.msrb.mxu1 %v492_v12 }
  0x4c   :  { %331 = vmatpush.bf16.msrb.mxu2 %v492_v12 }
  0x4d   :  { %349 = vmatpush.bf16.msrb.mxu3 %v492_v12 }
  0x4f   :  { %378 = vmatpush.bf16.msra.mxu1 %v667_v0  ;;  %451 = vmatmul.msk.bf16.gmra.mxu0 %vm135_vm0, %v487_v45 }
  0x53   :  { %379 = vmatpush.bf16.msra.mxu1 %v670_v2 }
  0x57   :  { %380 = vmatpush.bf16.msra.mxu1 %v675_v4 }
  0x5b   :  { %381 = vmatpush.bf16.msra.mxu1 %v680_v6 }
  0x5f   :  { %382 = vmatpush.bf16.msra.mxu1 %v495_v9 }
  0x63   :  { %383 = vmatpush.bf16.msra.mxu1 %v494_v10 }
  0x67   :  { %384 = vmatpush.bf16.msra.mxu1 %v493_v11 }
  0x6b   :  { %385 = vmatpush.bf16.msra.mxu1 %v492_v12 }
  0x9c   :  { %v157_v15 = vpop.f32.mrf.mxu0 }
  0x9d   :  { %v158_v16 = vadd.f32 %v711_v14, %v157_v15 }
  0xa4   :  { %v159_v23 = vpop.f32.mrf.mxu0 }
  0xa5   :  { %v160_v24 = vadd.f32 %v711_v14, %v159_v23 }
  0xab   :  { %v261_v17 = vpop.f32.mrf.mxu1 }
  0xac   :  { %v265_v18 = vadd.f32 %v261_v17, %v158_v16  ;;  %v162_v30 = vpop.f32.mrf.mxu0 }
  0xad   :  { %v163_v31 = vadd.f32 %v711_v14, %v162_v30 }
  0xae   :  { %508 = vtanh.f32 %v265_v18 }
  0xb3   :  { %v263_v19 = vpop.f32.mrf.mxu1 }
  0xb4   :  { %v509_v20 = vpop.eup %508  ;;  %v164_v38 = vpop.f32.mrf.mxu0 }
  0xb5   :  { %v269_v21 = vpack.c.bf16 %v509_v20, %v509_v20  ;;  %v165_v39 = vadd.f32 %v711_v14, %v164_v38 }
  0xb7   :  { %278 = vmatmul.bf16.vlgmr.msra.gmra.mxu2 %v269_v21 }
  0xbc   :  { %v167_v46 = vpop.f32.mrf.mxu0 }
  0xbd   :  { %v168_v47 = vadd.f32 %v711_v14, %v167_v46 }
  0xc4   :  { %v169_v53 = vpop.f32.mrf.mxu0 }
  0xc5   :  { %v170_v54 = vadd.f32 %v711_v14, %v169_v53 }
  0xcc   :  { %v172_v60 = vpop.f32.mrf.mxu0 }
  0xcd   :  { %v173_v62 = vadd.f32 %v711_v14, %v172_v60 }
  0xd4   :  { %v174_v61 = vpop.f32.mrf.mxu0 }
  0xd5   :  { %v175_v4 = vadd.f32 %v711_v14, %v174_v61 }
 0x13a   :  { %v279_v25 = vpop.f32.mrf.mxu2 }
 0x13b   :  { %v283_v26 = vadd.f32 %v279_v25, %v160_v24 }
 0x13d   :  { %510 = vtanh.f32 %v283_v26 }
 0x142   :  { %v281_v27 = vpop.f32.mrf.mxu2 }
 0x143   :  { %v511_v28 = vpop.eup %510 }
 0x144   :  { %v287_v29 = vpack.c.bf16 %v511_v28, %v511_v28 }
 0x146   :  { %296 = vmatmul.bf16.vlgmr.msra.gmra.mxu3 %v287_v29 }
 0x1c9   :  { %v297_v32 = vpop.f32.mrf.mxu3 }
 0x1ca   :  { %v301_v33 = vadd.f32 %v297_v32, %v163_v31 }
 0x1cc   :  { %512 = vtanh.f32 %v301_v33 }
 0x1d1   :  { %v299_v34 = vpop.f32.mrf.mxu3 }
 0x1d2   :  { %v513_v35 = vpop.eup %512 }
 0x1d3   :  { %v305_v36 = vpack.c.bf16 %v513_v35, %v513_v35 }
 0x1d5   :  { %314 = vmatmul.bf16.vlgmr.msrb.gmra.mxu1 %v305_v36 }
 0x252   :  { %v315_v40 = vpop.f32.mrf.mxu1 }
 0x253   :  { %v319_v41 = vadd.f32 %v315_v40, %v165_v39 }
 0x255   :  { %514 = vtanh.f32 %v319_v41 }
 0x25a   :  { %v317_v42 = vpop.f32.mrf.mxu1 }
 0x25b   :  { %v515_v43 = vpop.eup %514 }
 0x25c   :  { %v323_v44 = vpack.c.bf16 %v515_v43, %v515_v43 }
 0x25e   :  { %332 = vmatmul.bf16.vlgmr.msrb.gmra.mxu2 %v323_v44 }
 0x2e1   :  { %v333_v48 = vpop.f32.mrf.mxu2 }
 0x2e2   :  { %v337_v49 = vadd.f32 %v333_v48, %v168_v47 }
 0x2e4   :  { %516 = vtanh.f32 %v337_v49 }
 0x2e9   :  { %v335_v50 = vpop.f32.mrf.mxu2 }
 0x2ea   :  { %v517_v51 = vpop.eup %516 }
 0x2eb   :  { %v341_v52 = vpack.c.bf16 %v517_v51, %v517_v51 }
 0x2ed   :  { %350 = vmatmul.bf16.vlgmr.msrb.gmra.mxu3 %v341_v52 }
 0x370   :  { %v351_v55 = vpop.f32.mrf.mxu3 }
 0x371   :  { %v355_v56 = vadd.f32 %v351_v55, %v170_v54 }
 0x373   :  { %518 = vtanh.f32 %v355_v56 }
 0x378   :  { %v353_v57 = vpop.f32.mrf.mxu3 }
 0x379   :  { %v519_v58 = vpop.eup %518 }
 0x37a   :  { %v359_v59 = vpack.c.bf16 %v519_v58, %v519_v58 }
 0x37c   :  { %368 = vmatmul.bf16.vlgmr.msrb.gmra.mxu0 %v359_v59 }
 0x3f9   :  { %v369_v63 = vpop.f32.mrf.mxu0 }
 0x3fa   :  { %v373_v0 = vadd.f32 %v369_v63, %v173_v62 }
 0x3fc   :  { %520 = vtanh.f32 %v373_v0 }
 0x401   :  { %v371_v1 = vpop.f32.mrf.mxu0 }
 0x402   :  { %v521_v2 = vpop.eup %520 }
 0x403   :  { %v377_v3 = vpack.c.bf16 %v521_v2, %v521_v2 }
 0x405   :  { %386 = vmatmul.bf16.vlgmr.msra.gmra.mxu1 %v377_v3 }
 0x482   :  { %v387_v5 = vpop.f32.mrf.mxu1 }
 0x483   :  { %v391_v6 = vadd.f32 %v387_v5, %v175_v4 }
 0x485   :  { %522 = vtanh.f32 %v391_v6 }
 0x48a   :  { %v389_v7 = vpop.f32.mrf.mxu1 }
 0x48b   :  { %v523_v8 = vpop.eup %522 }
 0x48c   :  { %397 = vst [vmem:[#allocation10] sm:$0xff] %v523_v8 }
 0x48d   :  { %408 = dma.vmem_to_hbm [thread:$0]  %s404_s5, 128, %s406_s8, [#allocation6]  }
 0x48e   :  { %624 = dma.done.wait [#allocation6], 128  }
 0x48f   :  { %625 = vsyncadd [#allocation6], 4294967168 }
 0x490   :  { %413 = vsyncpa [#allocation5], 1 }
 0x491   :  { %414 = vsyncpa [#allocation8], 1 }
 0x492   :  { %415 = vsyncpa [#allocation6], 1 }

</bundles_post_ra>
